<compile_context>
chip_gen: v7x
topology: tpu7x:2x2x1
jax: 0.10.0
libtpu: 0.0.40
codegen_flags: <defaults>
</compile_context>

<pallas_src>
import functools

import jax
import jax.numpy as jnp
from jax.experimental import pallas as pl
from jax.experimental.pallas import tpu as pltpu


# ----------------------------- Pallas kernel -----------------------------

def _sum_unify_kernel(x_ref, o_ref, *, r, e):
    # x_ref: (tn, r*e) block with the relation axis flattened onto lanes.
    # o_ref: (tn, e) block.
    # Unrolled lane-slice adds, accumulated in float32 (VPU-only work).
    acc = x_ref[:, 0:e].astype(jnp.float32)
    for k in range(1, r):
        acc = acc + x_ref[:, k * e:(k + 1) * e].astype(jnp.float32)
    o_ref[...] = jnp.maximum(acc, 0.0).astype(o_ref.dtype)


def _round_up(v, m):
    return ((v + m - 1) // m) * m


def _choose_row_tile(n, r, e, dtype_bytes):
    """Pick a row-tile size tn (multiple of 8 when tiling)."""
    if n < 256:
        # Tiny problem: one grid step, no pipeline overhead. tn == n also
        # satisfies the block constraint even when n is not a multiple of 8.
        return n
    # Keep the double-buffered (input + output) footprint under ~24 MiB so
    # the pipeline stays fully double-buffered even on v7x (32 MiB scoped
    # default / 64 MiB physical VMEM); v5e/v6e have more headroom.
    vmem_budget = 24 * 1024 * 1024
    bytes_per_row = 2 * (r * e + e) * dtype_bytes
    tn_cap = max(8, (vmem_budget // bytes_per_row) // 8 * 8)
    # At least 2 grid steps (so both v7x TensorCores get work), large tiles
    # otherwise (amortize the ~0.35 us per-step overhead on v5e/v6e).
    tn = min(2048, tn_cap, _round_up(pl.cdiv(n, 2), 8))
    return max(8, min(tn, n))


def sum_unify_forward(x, *, tn=None):
    """relu(x.sum(axis=1)) for x of shape (n, r, e)."""
    n, r, e = x.shape
    dtype_bytes = jnp.dtype(x.dtype).itemsize

    if tn is None:
        tn = _choose_row_tile(n, r, e, dtype_bytes)
    tn = min(tn, n)

    # Flatten the relation axis into lanes: contiguous view, dense DMA,
    # no sublane padding of the (small) r axis.
    x2 = x.reshape(n, r * e)

    grid = (pl.cdiv(n, tn),)

    kernel = functools.partial(_sum_unify_kernel, r=r, e=e)

    cost = pl.CostEstimate(
        flops=n * r * e,
        transcendentals=0,
        bytes_accessed=(n * r * e + n * e) * dtype_bytes,
    )

    return pl.pallas_call(
        kernel,
        out_shape=jax.ShapeDtypeStruct((n, e), x.dtype),
        grid_spec=pltpu.PrefetchScalarGridSpec(
            num_scalar_prefetch=0,
            grid=grid,
            in_specs=[
                # Trailing dim equals the full array dim (r*e) -> always
                # satisfies the lane constraint; tn is n (single step) or a
                # multiple of 8 (sublane constraint).
                pl.BlockSpec((tn, r * e), lambda i: (i, 0)),
            ],
            out_specs=pl.BlockSpec((tn, e), lambda i: (i, 0)),
        ),
        compiler_params=pltpu.CompilerParams(
            dimension_semantics=("parallel",),
        ),
        cost_estimate=cost,
    )(x2)


# --------------------------------- main ---------------------------------

if __name__ == "__main__":
    n = 64     # number of nodes
    r = 4      # number of relations
    e = 128    # embedding dim (lane-dense output)

    key = jax.random.PRNGKey(0)
    x = jax.random.normal(key, (n, r, e), dtype=jnp.float32)

    h = sum_unify_forward(x)
    h = jax.block_until_ready(h)

    # Reference check in plain JAX.
    h_ref = jnp.maximum(jnp.sum(x, axis=1), 0.0)
    assert h.shape == (n, e)
    assert h.dtype == x.dtype
    assert jnp.allclose(h, h_ref, atol=1e-6, rtol=1e-6)

    print("KERNEL_OK")
</pallas_src>

<mosaic_0001>
module attributes {stable_mosaic.version = 11 : i64} {
  func.func @_sum_unify_kernel(%arg0: i32, %arg1: memref<64x512xf32, #tpu.memory_space<vmem>>, %arg2: memref<64x128xf32, #tpu.memory_space<vmem>>) attributes {dimension_semantics = [#tpu.dimension_semantics<parallel>], iteration_bounds = array<i64: 1>, scalar_prefetch = 0 : i64, scratch_operands = 0 : i64, tpu.core_type = #tpu.core_type<tc>, window_params = [{transform_indices = @transform_0, window_bounds = array<i64: 64, 512>}, {transform_indices = @transform_1, window_bounds = array<i64: 64, 128>}]} {
    %c0 = arith.constant 0 : index
    %c0_0 = arith.constant 0 : index
    %0 = vector.load %arg1[%c0, %c0_0] : memref<64x512xf32, #tpu.memory_space<vmem>>, vector<64x128xf32>
    %c0_1 = arith.constant 0 : index
    %c128 = arith.constant 128 : index
    %1 = vector.load %arg1[%c0_1, %c128] : memref<64x512xf32, #tpu.memory_space<vmem>>, vector<64x128xf32>
    %2 = arith.addf %0, %1 : vector<64x128xf32>
    %c0_2 = arith.constant 0 : index
    %c256 = arith.constant 256 : index
    %3 = vector.load %arg1[%c0_2, %c256] : memref<64x512xf32, #tpu.memory_space<vmem>>, vector<64x128xf32>
    %4 = arith.addf %2, %3 : vector<64x128xf32>
    %c0_3 = arith.constant 0 : index
    %c384 = arith.constant 384 : index
    %5 = vector.load %arg1[%c0_3, %c384] : memref<64x512xf32, #tpu.memory_space<vmem>>, vector<64x128xf32>
    %6 = arith.addf %4, %5 : vector<64x128xf32>
    %cst = arith.constant 0.000000e+00 : f32
    %7 = vector.broadcast %cst : f32 to vector<64x128xf32>
    %8 = arith.maximumf %6, %7 : vector<64x128xf32>
    %c0_4 = arith.constant 0 : index
    %c0_5 = arith.constant 0 : index
    %9 = vector.load %arg2[%c0_4, %c0_5] : memref<64x128xf32, #tpu.memory_space<vmem>>, vector<64x128xf32>
    tpu.vector_store %arg2[%c0_4, %c0_5], %8 {strides = array<i32>} : memref<64x128xf32, #tpu.memory_space<vmem>>, vector<64x128xf32>,
    return
  }
  func.func @transform_0(%arg0: i32) -> (i32, i32) {
    %c0_i32 = arith.constant 0 : i32
    %c0_i32_0 = arith.constant 0 : i32
    return %arg0, %c0_i32 : i32, i32
  }
  func.func @transform_1(%arg0: i32) -> (i32, i32) {
    %c0_i32 = arith.constant 0 : i32
    %c0_i32_0 = arith.constant 0 : i32
    return %arg0, %c0_i32 : i32, i32
  }
}

</mosaic_0001>

<bundles_post_ra>
// kernel: tpu_custom_call.1
= control target key start
LH: loop header
LB: loop body
LE: loop exit
PB: predicated region body
PF: predicated region fallthrough
CT: control target
= control target key end

     0   :  { %6 = vsyncpa [#allocation3], 0  ;;  %s206_s0 = inlined_call_operand.hbm [shape: f32[64,512], index: 0, kind: input, shape index: {}]   ;;  %s207_s1 = inlined_call_operand.hbm [shape: f32[64,128], index: 1, kind: output, shape index: {}]  }
   0x1   :  { %7 = vsyncpa [#allocation4], 0  ;;  %s166_s6 = smov [#allocation2]   ;;  %s118_s10 = scalar_lea.hbm %s206_s0, 4096 }
   0x2   :  { %s13_s7 = sshll.u32 %s166_s6, 4  ;;  %p119_p0 = scmp.ne.s32.totalorder %s206_s0, %s118_s10  ;;  %s14_s7 = int_to_ptr.vmem [resolvable:$true] %s13_s7 }
   0x3   :  { %p122_p1 = scmp.lt.u32.totalorder %s118_s10, %s206_s0 }
   0x5   :  { %p124_p2 = pnand %p122_p1, %p119_p0 }
   0x7   :  { %127 = shalt.err (!%p124_p2)
}
   0x8   :  { %s128_s15 = scalar_lea.vmem %s14_s7, 4096  ;;  %p133_p4 = scmp.lt.s32.totalorder %s14_s7, %s14_s7 }
   0x9   :  { %p129_p3 = scmp.ne.s32.totalorder %s14_s7, %s128_s15  ;;  %p134_p5 = scmp.lt.s32.totalorder %s128_s15, %s128_s15 }
   0xb   :  { %p135_p6 = por %p134_p5, %p133_p4 }
   0xd   :  { %p136_p7 = pnand %p135_p6, %p129_p3 }
   0xf   :  { %139 = shalt.err (!%p136_p7)
}
  0x10   :  { %s167_s16 = smov 512   ;;  %s168_s17 = smov 32  }
  0x11   :  { %19 = dma.hbm_to_vmem [thread:$0]  %s206_s0, 4096, %s14_s7, [#allocation3], %s167_s16, %s167_s16, %s168_s17  }
  0x12   :  { %162 = dma.done.wait [#allocation3], 4096  }
  0x13   :  { %163 = vsyncadd [#allocation3], 4294963200  ;;  %v23_v0 = vld [vmem:[#allocation2] sm:$0xff]  ;;  %v31_v1 = vld [vmem:[#allocation2 + $0x8] sm:$0xff]  ;;  %s169_s0 = smov [#allocation5]  }
  0x14   :  { %v47_v2 = vld [vmem:[#allocation2 + $0x10] sm:$0xff]  ;;  %v39_v3 = vadd.f32 %v31_v1, %v23_v0  ;;  %v24_v4 = vld [vmem:[#allocation2 + $0x20] sm:$0xff]  ;;  %v32_v5 = vld [vmem:[#allocation2 + $0x28] sm:$0xff]  ;;  %s100_s20 = sshll.u32 %s169_s0, 4  ;;  %s101_s20 = int_to_ptr.vmem [resolvable:$true] %s100_s20 }
  0x15   :  { %v63_v6 = vld [vmem:[#allocation2 + $0x18] sm:$0xff]  ;;  %v40_v7 = vadd.f32 %v32_v5, %v24_v4  ;;  %v48_v8 = vld [vmem:[#allocation2 + $0x30] sm:$0xff]  ;;  %v25_v9 = vld [vmem:[#allocation2 + $0x40] sm:$0xff]  ;;  %s140_s21 = scalar_lea.vmem %s101_s20, 1024  ;;  %p145_p9 = scmp.lt.s32.totalorder %s101_s20, %s101_s20 }
  0x16   :  { %v55_v10 = vadd.f32 %v47_v2, %v39_v3  ;;  %v64_v11 = vld [vmem:[#allocation2 + $0x38] sm:$0xff]  ;;  %v33_v12 = vld [vmem:[#allocation2 + $0x48] sm:$0xff]  ;;  %v49_v13 = vld [vmem:[#allocation2 + $0x50] sm:$0xff]  ;;  %p141_p8 = scmp.ne.s32.totalorder %s101_s20, %s140_s21  ;;  %p146_p10 = scmp.lt.s32.totalorder %s140_s21, %s140_s21 }
  0x17   :  { %v56_v14 = vadd.f32 %v48_v8, %v40_v7  ;;  %v41_v15 = vadd.f32 %v33_v12, %v25_v9  ;;  %v26_v16 = vld [vmem:[#allocation2 + $0x60] sm:$0xff]  ;;  %v34_v17 = vld [vmem:[#allocation2 + $0x68] sm:$0xff]  ;;  %v50_v18 = vld [vmem:[#allocation2 + $0x70] sm:$0xff] }
  0x18   :  { %v71_v19 = vadd.f32 %v63_v6, %v55_v10  ;;  %v65_v20 = vld [vmem:[#allocation2 + $0x58] sm:$0xff]  ;;  %v42_v21 = vadd.f32 %v34_v17, %v26_v16  ;;  %v27_v22 = vld [vmem:[#allocation2 + $0x80] sm:$0xff]  ;;  %v35_v23 = vld [vmem:[#allocation2 + $0x88] sm:$0xff]  ;;  %p147_p11 = por %p146_p10, %p145_p9 }
  0x19   :  { %v72_v24 = vadd.f32 %v64_v11, %v56_v14  ;;  %v57_v25 = vadd.f32 %v49_v13, %v41_v15  ;;  %v66_v26 = vld [vmem:[#allocation2 + $0x78] sm:$0xff]  ;;  %v43_v27 = vadd.f32 %v35_v23, %v27_v22  ;;  %v51_v28 = vld [vmem:[#allocation2 + $0x90] sm:$0xff]  ;;  %v28_v29 = vld [vmem:[#allocation2 + $0xa0] sm:$0xff] }
  0x1a   :  { %v79_v30 = vmax.f32 %v71_v19, 0.0  ;;  %v58_v31 = vadd.f32 %v50_v18, %v42_v21  ;;  %v67_v32 = vld [vmem:[#allocation2 + $0x98] sm:$0xff]  ;;  %v36_v33 = vld [vmem:[#allocation2 + $0xa8] sm:$0xff]  ;;  %v52_v34 = vld [vmem:[#allocation2 + $0xb0] sm:$0xff]  ;;  %p148_p12 = pnand %p147_p11, %p141_p8 }
  0x1b   :  { %v80_v35 = vmax.f32 %v72_v24, 0.0  ;;  %v73_v36 = vadd.f32 %v65_v20, %v57_v25  ;;  %v59_v37 = vadd.f32 %v51_v28, %v43_v27  ;;  %v44_v38 = vadd.f32 %v36_v33, %v28_v29  ;;  %v29_v39 = vld [vmem:[#allocation2 + $0xc0] sm:$0xff]  ;;  %v37_v40 = vld [vmem:[#allocation2 + $0xc8] sm:$0xff]  ;;  %v53_v41 = vld [vmem:[#allocation2 + $0xd0] sm:$0xff] }
  0x1c   :  { %87 = vst [vmem:[#allocation5] sm:$0xff] %v79_v30  ;;  %v74_v42 = vadd.f32 %v66_v26, %v58_v31  ;;  %v68_v43 = vld [vmem:[#allocation2 + $0xb8] sm:$0xff]  ;;  %v45_v44 = vadd.f32 %v37_v40, %v29_v39  ;;  %v30_v45 = vld [vmem:[#allocation2 + $0xe0] sm:$0xff]  ;;  %v38_v46 = vld [vmem:[#allocation2 + $0xe8] sm:$0xff] }
  0x1d   :  { %88 = vst [vmem:[#allocation5 + $0x8] sm:$0xff] %v80_v35  ;;  %v81_v47 = vmax.f32 %v73_v36, 0.0  ;;  %v75_v48 = vadd.f32 %v67_v32, %v59_v37  ;;  %v60_v49 = vadd.f32 %v52_v34, %v44_v38  ;;  %v69_v50 = vld [vmem:[#allocation2 + $0xd8] sm:$0xff]  ;;  %v46_v51 = vadd.f32 %v38_v46, %v30_v45  ;;  %v54_v52 = vld [vmem:[#allocation2 + $0xf0] sm:$0xff] }
  0x1e   :  { %v82_v53 = vmax.f32 %v74_v42, 0.0  ;;  %v61_v54 = vadd.f32 %v53_v41, %v45_v44  ;;  %v70_v55 = vld [vmem:[#allocation2 + $0xf8] sm:$0xff] }
  0x1f   :  { %89 = vst [vmem:[#allocation5 + $0x10] sm:$0xff] %v81_v47  ;;  %v83_v56 = vmax.f32 %v75_v48, 0.0  ;;  %v76_v57 = vadd.f32 %v68_v43, %v60_v49  ;;  %v62_v58 = vadd.f32 %v54_v52, %v46_v51 }
  0x20   :  { %90 = vst [vmem:[#allocation5 + $0x18] sm:$0xff] %v82_v53  ;;  %v77_v59 = vadd.f32 %v69_v50, %v61_v54 }
  0x21   :  { %91 = vst [vmem:[#allocation5 + $0x20] sm:$0xff] %v83_v56  ;;  %v84_v60 = vmax.f32 %v76_v57, 0.0  ;;  %v78_v61 = vadd.f32 %v70_v55, %v62_v58 }
  0x22   :  { %v85_v62 = vmax.f32 %v77_v59, 0.0 }
  0x23   :  { %92 = vst [vmem:[#allocation5 + $0x28] sm:$0xff] %v84_v60  ;;  %v86_v63 = vmax.f32 %v78_v61, 0.0 }
  0x24   :  { %93 = vst [vmem:[#allocation5 + $0x30] sm:$0xff] %v85_v62 }
  0x25   :  { %94 = vst [vmem:[#allocation5 + $0x38] sm:$0xff] %v86_v63 }
  0x26   :  { %151 = shalt.err (!%p148_p12)
}
  0x27   :  { %s152_s24 = scalar_lea.hbm %s207_s1, 1024 }
  0x28   :  { %p153_p13 = scmp.ne.s32.totalorder %s207_s1, %s152_s24  ;;  %p156_p0 = scmp.lt.u32.totalorder %s152_s24, %s207_s1 }
  0x2a   :  { %p158_p1 = pnand %p156_p0, %p153_p13 }
  0x2c   :  { %161 = shalt.err (!%p158_p1)
}
  0x2d   :  { %s170_s29 = smov 128   ;;  %s171_s30 = smov 8  }
  0x2e   :  { %106 = dma.vmem_to_hbm [thread:$0]  %s101_s20, 1024, %s207_s1, [#allocation4], %s170_s29, %s170_s29, %s171_s30  }
  0x2f   :  { %164 = dma.done.wait [#allocation4], 1024  }
  0x30   :  { %165 = vsyncadd [#allocation4], 4294966272 }
  0x31   :  { %110 = vsyncpa [#allocation3], 1 }
  0x32   :  { %111 = vsyncpa [#allocation4], 1 }

</bundles_post_ra>
